<compile_context>
chip_gen: v7x
topology: tpu7x:2x2x1
jax: 0.10.0
libtpu: 0.0.40
codegen_flags: <defaults>
</compile_context>

<pallas_src>
import functools

import jax
import jax.numpy as jnp
from jax.experimental import pallas as pl
from jax.experimental.pallas import tpu as pltpu

LATENT = 20
H1 = 128
H2 = 64
LANE = 128


def _round_up(n, m):
    return (n + m - 1) // m * m


def _layout(d):
    """Lane layout of the combined input/output slab for feature dim d."""
    dp = _round_up(d, LANE)              # lane-dense width of the x / out region
    packed = (dp - d) >= LATENT          # noise/mu fit inside x/out padding lanes
    d0 = d if packed else dp             # lane where noise (input) / mu (output) start
    din = _round_up(d0 + LATENT, LANE)   # total slab width (input and output)
    off = d0 % LANE                      # latent offset inside its 128-lane chunk
    return dp, packed, d0, din, off


def vae_kernel(x_ref,
               w1_ref, b1_ref,          # downblock Linear(input_size, 128)
               w2_ref, b2_ref,          # downblock Linear(128, 64)   (64 padded to 128)
               wl_ref, bl_ref,          # latent_block Linear(64, 20) (placed at lane `off`)
               wu1_ref, bu1_ref,        # upblock Linear(20, 64)
               wu2_ref, bu2_ref,        # upblock Linear(64, input_size) (see NOTE above)
               out_ref, *, dp, packed):
    xall = x_ref[...]                                   # (TB, Din) bf16: x + packed noise
    din = xall.shape[-1]

    # The last 128-lane chunk of the slab carries the uniform noise at the same lane
    # offset the latent weights were placed at. Everything else in that chunk is x
    # data or zero padding and is masked out later by lat's zero lanes.
    noise = xall[:, din - 128:din].astype(jnp.float32)

    # downblock: Linear -> ReLU -> Linear -> ReLU  (bf16 MXU, f32 accumulate).
    # Noise / pad rows of w1 are zero, so the packed lanes don't perturb the matmul.
    h1 = jnp.dot(xall, w1_ref[...], preferred_element_type=jnp.float32) + b1_ref[...]
    h1 = jnp.maximum(h1, 0.0).astype(jnp.bfloat16)
    h2 = jnp.dot(h1, w2_ref[...], preferred_element_type=jnp.float32) + b2_ref[...]
    h2 = jnp.maximum(h2, 0.0).astype(jnp.bfloat16)

    # latent_block: Linear -> ReLU. Applied twice with the same weights in torch,
    # so mu == std; lat occupies lanes [off, off+LATENT) of its 128-lane block.
    lat = jnp.dot(h2, wl_ref[...], preferred_element_type=jnp.float32) + bl_ref[...]
    lat = jnp.maximum(lat, 0.0)                         # f32

    # reparameterization = mu + std * rand = lat * (noise + 1); lat's zero lanes
    # mask whatever non-noise data sits in the noise chunk.
    rep = (lat * (noise + 1.0)).astype(jnp.bfloat16)

    # upblock: Linear -> ReLU -> Linear -> ReLU
    u1 = jnp.dot(rep, wu1_ref[...], preferred_element_type=jnp.float32) + bu1_ref[...]
    u1 = jnp.maximum(u1, 0.0).astype(jnp.bfloat16)
    out = jnp.dot(u1, wu2_ref[...], preferred_element_type=jnp.float32) + bu2_ref[...]
    out = jnp.maximum(out, 0.0)                         # (TB, dp) f32

    odt = out_ref.dtype
    if packed:
        # mu reuses out's zero-padded lanes: out is exactly 0 there and lat is
        # exactly 0 everywhere else in the chunk, so a plain add merges them.
        if dp > 128:
            out_ref[:, : dp - 128] = out[:, : dp - 128].astype(odt)
        out_ref[:, dp - 128: dp] = (out[:, dp - 128:] + lat).astype(odt)
    else:
        out_ref[:, :dp] = out.astype(odt)
        out_ref[:, dp: dp + 128] = lat.astype(odt)


def prepare_params(params, input_size):
    """One-time zero-padding / bf16 cast of the raw (in, out)-layout weights.

    Call once at init and reuse the result for every vae_forward call.
    """
    w1, b1, w2, b2, wl, bl, wu1, bu1, wu2, bu2 = params
    d = input_size
    dp, _, _, din, off = _layout(d)
    bf, f32 = jnp.bfloat16, jnp.float32
    h2p = LANE  # H2=64 padded to 128 -> lane-dense intermediates

    w1p = jnp.zeros((din, H1), bf).at[:d, :].set(w1.astype(bf))
    b1p = b1.reshape(1, H1).astype(f32)
    w2p = jnp.zeros((H1, h2p), bf).at[:, :H2].set(w2.astype(bf))
    b2p = jnp.zeros((1, h2p), f32).at[:, :H2].set(b2.reshape(1, H2).astype(f32))
    # Latent weights/bias placed at lane offset `off` so lat lines up with the
    # noise lanes packed into the x slab (and with mu's lanes in the out slab).
    wlp = jnp.zeros((h2p, LANE), bf).at[:H2, off:off + LATENT].set(wl.astype(bf))
    blp = jnp.zeros((1, LANE), f32).at[:, off:off + LATENT].set(
        bl.reshape(1, LATENT).astype(f32))
    wu1p = jnp.zeros((LANE, h2p), bf).at[off:off + LATENT, :H2].set(wu1.astype(bf))
    bu1p = jnp.zeros((1, h2p), f32).at[:, :H2].set(bu1.reshape(1, H2).astype(f32))
    wu2p = jnp.zeros((h2p, dp), bf).at[:H2, :d].set(wu2.astype(bf))
    bu2p = jnp.zeros((1, dp), f32).at[:, :d].set(bu2.reshape(1, d).astype(f32))
    return (w1p, b1p, w2p, b2p, wlp, blp, wu1p, bu1p, wu2p, bu2p)


@functools.partial(jax.jit, static_argnames=("block_b",))
def vae_forward(x, noise, padded_params, block_b=2048):
    """Returns (output, mu, std) with std == mu (same latent_block weights twice)."""
    B, D = x.shape
    dp, packed, d0, din, _ = _layout(D)

    # Batch tile: multiple of 16 (bf16 sublane packing), capped so the grid has
    # at least 2 steps when possible (v7x has 2 TensorCores to shard across).
    tb = min(block_b, _round_up(B, 16))
    if B > 16:
        tb = min(tb, _round_up(-(-B // 2), 16))
    bp = _round_up(B, tb)

    bf = jnp.bfloat16
    # Single combined input slab: x in lanes [0, D), bf16 noise in lanes [d0, d0+LATENT).
    slab = jnp.zeros((bp, din), bf)
    slab = slab.at[:B, :D].set(x.astype(bf))
    slab = slab.at[:B, d0:d0 + LATENT].set(noise.astype(bf))

    def row_spec(cols):
        return pl.BlockSpec((tb, cols), lambda i: (i, 0))

    def const_spec(a):
        # Same block every grid step -> stays VMEM-resident, no re-DMA.
        return pl.BlockSpec(a.shape, lambda i: (0, 0))

    out_slab = pl.pallas_call(
        functools.partial(vae_kernel, dp=dp, packed=packed),
        grid=(bp // tb,),
        in_specs=[row_spec(din)] + [const_spec(a) for a in padded_params],
        out_specs=row_spec(din),
        out_shape=jax.ShapeDtypeStruct((bp, din), bf),
        compiler_params=pltpu.CompilerParams(
            dimension_semantics=("parallel",),
        ),
    )(slab, *padded_params)

    # Consumers that can work on the padded slab directly can skip these slices.
    out = out_slab[:B, :D]
    mu = out_slab[:B, d0:d0 + LATENT]
    return out, mu, mu   # std == mu by construction (shared latent_block weights)


def init_linear(key, fan_in, fan_out):
    """Deterministic PyTorch-style uniform(-1/sqrt(fan_in), 1/sqrt(fan_in)) init."""
    kw, kb = jax.random.split(key)
    bound = 1.0 / (fan_in ** 0.5)
    w = jax.random.uniform(kw, (fan_in, fan_out), jnp.float32, -bound, bound)
    b = jax.random.uniform(kb, (fan_out,), jnp.float32, -bound, bound)
    return w, b


def ref_forward(x, noise, params):
    """Plain-JAX reference with matching bf16-in / f32-accumulate precision."""
    w1, b1, w2, b2, wl, bl, wu1, bu1, wu2, bu2 = params
    bf = jnp.bfloat16

    def lin(a, w, b):
        return jnp.dot(a.astype(bf), w.astype(bf),
                       preferred_element_type=jnp.float32) + b.reshape(1, -1)

    h = jnp.maximum(lin(x, w1, b1), 0.0)
    h = jnp.maximum(lin(h, w2, b2), 0.0)
    lat = jnp.maximum(lin(h, wl, bl), 0.0)
    rep = lat * (noise.astype(bf).astype(jnp.float32) + 1.0)
    u = jnp.maximum(lin(rep, wu1, bu1), 0.0)
    o = jnp.maximum(lin(u, wu2, bu2), 0.0)
    return o.astype(bf), lat.astype(bf), lat.astype(bf)


if __name__ == "__main__":
    key = jax.random.PRNGKey(0)
    B = 8
    INPUT_SIZE = 64

    keys = jax.random.split(key, 8)
    x = jax.random.normal(keys[0], (B, INPUT_SIZE), jnp.float32)
    # torch.rand_like (uniform [0,1)) reproduced with a deterministic uniform array.
    noise = jax.random.uniform(keys[1], (B, LATENT), jnp.float32)

    w1, b1 = init_linear(keys[2], INPUT_SIZE, H1)    # Linear(input_size, 128)
    w2, b2 = init_linear(keys[3], H1, H2)            # Linear(128, 64)
    wl, bl = init_linear(keys[4], H2, LATENT)        # Linear(64, 20)
    wu1, bu1 = init_linear(keys[5], LATENT, H2)      # Linear(20, 64)
    wu2, bu2 = init_linear(keys[6], H2, INPUT_SIZE)  # Linear(64, input_size) (see NOTE)

    params = (w1, b1, w2, b2, wl, bl, wu1, bu1, wu2, bu2)
    padded_params = prepare_params(params, INPUT_SIZE)   # one-time pad/cast, then reused

    out, mu, std = vae_forward(x, noise, padded_params)
    jax.block_until_ready((out, mu, std))

    # Sanity check against a plain-JAX reference with matching precision.
    o_r, mu_r, std_r = ref_forward(x, noise, params)
    assert jnp.allclose(out.astype(jnp.float32), o_r.astype(jnp.float32),
                        atol=2e-2, rtol=2e-2)
    assert jnp.allclose(mu.astype(jnp.float32), mu_r.astype(jnp.float32),
                        atol=2e-2, rtol=2e-2)
    assert jnp.allclose(std.astype(jnp.float32), std_r.astype(jnp.float32),
                        atol=2e-2, rtol=2e-2)

    print("KERNEL_OK")
</pallas_src>

<mosaic_0001>
module attributes {stable_mosaic.version = 11 : i64} {
  func.func @vae_kernel(%arg0: i32, %arg1: memref<16x128xbf16, #tpu.memory_space<vmem>>, %arg2: memref<128x128xbf16, #tpu.memory_space<vmem>>, %arg3: memref<1x128xf32, #tpu.memory_space<vmem>>, %arg4: memref<128x128xbf16, #tpu.memory_space<vmem>>, %arg5: memref<1x128xf32, #tpu.memory_space<vmem>>, %arg6: memref<128x128xbf16, #tpu.memory_space<vmem>>, %arg7: memref<1x128xf32, #tpu.memory_space<vmem>>, %arg8: memref<128x128xbf16, #tpu.memory_space<vmem>>, %arg9: memref<1x128xf32, #tpu.memory_space<vmem>>, %arg10: memref<128x128xbf16, #tpu.memory_space<vmem>>, %arg11: memref<1x128xf32, #tpu.memory_space<vmem>>, %arg12: memref<16x128xbf16, #tpu.memory_space<vmem>>) attributes {dimension_semantics = [#tpu.dimension_semantics<parallel>], iteration_bounds = array<i64: 1>, scalar_prefetch = 0 : i64, scratch_operands = 0 : i64, tpu.core_type = #tpu.core_type<tc>, window_params = [{transform_indices = @transform_0, window_bounds = array<i64: 16, 128>}, {pipeline_mode = #tpu.pipeline_mode<synchronous>, transform_indices = @transform_1, window_bounds = array<i64: 128, 128>}, {pipeline_mode = #tpu.pipeline_mode<synchronous>, transform_indices = @transform_2, window_bounds = array<i64: 1, 128>}, {pipeline_mode = #tpu.pipeline_mode<synchronous>, transform_indices = @transform_3, window_bounds = array<i64: 128, 128>}, {pipeline_mode = #tpu.pipeline_mode<synchronous>, transform_indices = @transform_4, window_bounds = array<i64: 1, 128>}, {pipeline_mode = #tpu.pipeline_mode<synchronous>, transform_indices = @transform_5, window_bounds = array<i64: 128, 128>}, {pipeline_mode = #tpu.pipeline_mode<synchronous>, transform_indices = @transform_6, window_bounds = array<i64: 1, 128>}, {pipeline_mode = #tpu.pipeline_mode<synchronous>, transform_indices = @transform_7, window_bounds = array<i64: 128, 128>}, {pipeline_mode = #tpu.pipeline_mode<synchronous>, transform_indices = @transform_8, window_bounds = array<i64: 1, 128>}, {pipeline_mode = #tpu.pipeline_mode<synchronous>, transform_indices = @transform_9, window_bounds = array<i64: 128, 128>}, {pipeline_mode = #tpu.pipeline_mode<synchronous>, transform_indices = @transform_10, window_bounds = array<i64: 1, 128>}, {transform_indices = @transform_11, window_bounds = array<i64: 16, 128>}]} {
    %c0 = arith.constant 0 : index
    %c0_0 = arith.constant 0 : index
    %0 = vector.load %arg1[%c0, %c0_0] : memref<16x128xbf16, #tpu.memory_space<vmem>>, vector<16x128xbf16>
    %1 = arith.extf %0 : vector<16x128xbf16> to vector<16x128xf32>
    %c0_1 = arith.constant 0 : index
    %c0_2 = arith.constant 0 : index
    %2 = vector.load %arg2[%c0_1, %c0_2] : memref<128x128xbf16, #tpu.memory_space<vmem>>, vector<128x128xbf16>
    %cst = arith.constant dense<0.000000e+00> : vector<16x128xf32>
    %3 = tpu.matmul %0, %2, %cst {dimension_numbers = #tpu.dot_dimension_numbers<[1], [0], [0], [1], [0, 0, 1, 1], [], []>} : vector<16x128xbf16>, vector<128x128xbf16>, vector<16x128xf32> -> vector<16x128xf32>
    %c0_3 = arith.constant 0 : index
    %c0_4 = arith.constant 0 : index
    %4 = vector.load %arg3[%c0_3, %c0_4] : memref<1x128xf32, #tpu.memory_space<vmem>>, vector<1x128xf32>
    %5 = vector.broadcast %4 : vector<1x128xf32> to vector<16x128xf32>
    %6 = arith.addf %3, %5 : vector<16x128xf32>
    %cst_5 = arith.constant 0.000000e+00 : f32
    %7 = vector.broadcast %cst_5 : f32 to vector<16x128xf32>
    %8 = arith.maximumf %6, %7 : vector<16x128xf32>
    %9 = arith.truncf %8 : vector<16x128xf32> to vector<16x128xbf16>
    %c0_6 = arith.constant 0 : index
    %c0_7 = arith.constant 0 : index
    %10 = vector.load %arg4[%c0_6, %c0_7] : memref<128x128xbf16, #tpu.memory_space<vmem>>, vector<128x128xbf16>
    %cst_8 = arith.constant dense<0.000000e+00> : vector<16x128xf32>
    %11 = tpu.matmul %9, %10, %cst_8 {dimension_numbers = #tpu.dot_dimension_numbers<[1], [0], [0], [1], [0, 0, 1, 1], [], []>} : vector<16x128xbf16>, vector<128x128xbf16>, vector<16x128xf32> -> vector<16x128xf32>
    %c0_9 = arith.constant 0 : index
    %c0_10 = arith.constant 0 : index
    %12 = vector.load %arg5[%c0_9, %c0_10] : memref<1x128xf32, #tpu.memory_space<vmem>>, vector<1x128xf32>
    %13 = vector.broadcast %12 : vector<1x128xf32> to vector<16x128xf32>
    %14 = arith.addf %11, %13 : vector<16x128xf32>
    %cst_11 = arith.constant 0.000000e+00 : f32
    %15 = vector.broadcast %cst_11 : f32 to vector<16x128xf32>
    %16 = arith.maximumf %14, %15 : vector<16x128xf32>
    %17 = arith.truncf %16 : vector<16x128xf32> to vector<16x128xbf16>
    %c0_12 = arith.constant 0 : index
    %c0_13 = arith.constant 0 : index
    %18 = vector.load %arg6[%c0_12, %c0_13] : memref<128x128xbf16, #tpu.memory_space<vmem>>, vector<128x128xbf16>
    %cst_14 = arith.constant dense<0.000000e+00> : vector<16x128xf32>
    %19 = tpu.matmul %17, %18, %cst_14 {dimension_numbers = #tpu.dot_dimension_numbers<[1], [0], [0], [1], [0, 0, 1, 1], [], []>} : vector<16x128xbf16>, vector<128x128xbf16>, vector<16x128xf32> -> vector<16x128xf32>
    %c0_15 = arith.constant 0 : index
    %c0_16 = arith.constant 0 : index
    %20 = vector.load %arg7[%c0_15, %c0_16] : memref<1x128xf32, #tpu.memory_space<vmem>>, vector<1x128xf32>
    %21 = vector.broadcast %20 : vector<1x128xf32> to vector<16x128xf32>
    %22 = arith.addf %19, %21 : vector<16x128xf32>
    %cst_17 = arith.constant 0.000000e+00 : f32
    %23 = vector.broadcast %cst_17 : f32 to vector<16x128xf32>
    %24 = arith.maximumf %22, %23 : vector<16x128xf32>
    %cst_18 = arith.constant 1.000000e+00 : f32
    %25 = vector.broadcast %cst_18 : f32 to vector<16x128xf32>
    %26 = arith.addf %1, %25 : vector<16x128xf32>
    %27 = arith.mulf %24, %26 : vector<16x128xf32>
    %28 = arith.truncf %27 : vector<16x128xf32> to vector<16x128xbf16>
    %c0_19 = arith.constant 0 : index
    %c0_20 = arith.constant 0 : index
    %29 = vector.load %arg8[%c0_19, %c0_20] : memref<128x128xbf16, #tpu.memory_space<vmem>>, vector<128x128xbf16>
    %cst_21 = arith.constant dense<0.000000e+00> : vector<16x128xf32>
    %30 = tpu.matmul %28, %29, %cst_21 {dimension_numbers = #tpu.dot_dimension_numbers<[1], [0], [0], [1], [0, 0, 1, 1], [], []>} : vector<16x128xbf16>, vector<128x128xbf16>, vector<16x128xf32> -> vector<16x128xf32>
    %c0_22 = arith.constant 0 : index
    %c0_23 = arith.constant 0 : index
    %31 = vector.load %arg9[%c0_22, %c0_23] : memref<1x128xf32, #tpu.memory_space<vmem>>, vector<1x128xf32>
    %32 = vector.broadcast %31 : vector<1x128xf32> to vector<16x128xf32>
    %33 = arith.addf %30, %32 : vector<16x128xf32>
    %cst_24 = arith.constant 0.000000e+00 : f32
    %34 = vector.broadcast %cst_24 : f32 to vector<16x128xf32>
    %35 = arith.maximumf %33, %34 : vector<16x128xf32>
    %36 = arith.truncf %35 : vector<16x128xf32> to vector<16x128xbf16>
    %c0_25 = arith.constant 0 : index
    %c0_26 = arith.constant 0 : index
    %37 = vector.load %arg10[%c0_25, %c0_26] : memref<128x128xbf16, #tpu.memory_space<vmem>>, vector<128x128xbf16>
    %cst_27 = arith.constant dense<0.000000e+00> : vector<16x128xf32>
    %38 = tpu.matmul %36, %37, %cst_27 {dimension_numbers = #tpu.dot_dimension_numbers<[1], [0], [0], [1], [0, 0, 1, 1], [], []>} : vector<16x128xbf16>, vector<128x128xbf16>, vector<16x128xf32> -> vector<16x128xf32>
    %c0_28 = arith.constant 0 : index
    %c0_29 = arith.constant 0 : index
    %39 = vector.load %arg11[%c0_28, %c0_29] : memref<1x128xf32, #tpu.memory_space<vmem>>, vector<1x128xf32>
    %40 = vector.broadcast %39 : vector<1x128xf32> to vector<16x128xf32>
    %41 = arith.addf %38, %40 : vector<16x128xf32>
    %cst_30 = arith.constant 0.000000e+00 : f32
    %42 = vector.broadcast %cst_30 : f32 to vector<16x128xf32>
    %43 = arith.maximumf %41, %42 : vector<16x128xf32>
    %44 = arith.addf %43, %24 : vector<16x128xf32>
    %45 = arith.truncf %44 : vector<16x128xf32> to vector<16x128xbf16>
    %c0_31 = arith.constant 0 : index
    %c0_32 = arith.constant 0 : index
    %46 = vector.load %arg12[%c0_31, %c0_32] : memref<16x128xbf16, #tpu.memory_space<vmem>>, vector<16x128xbf16>
    tpu.vector_store %arg12[%c0_31, %c0_32], %45 {strides = array<i32>} : memref<16x128xbf16, #tpu.memory_space<vmem>>, vector<16x128xbf16>,
    return
  }
  func.func @transform_0(%arg0: i32) -> (i32, i32) {
    %c0_i32 = arith.constant 0 : i32
    %c0_i32_0 = arith.constant 0 : i32
    return %arg0, %c0_i32 : i32, i32
  }
  func.func @transform_1(%arg0: i32) -> (i32, i32) {
    %c0_i32 = arith.constant 0 : i32
    %c0_i32_0 = arith.constant 0 : i32
    %c0_i32_1 = arith.constant 0 : i32
    return %c0_i32, %c0_i32_0 : i32, i32
  }
  func.func @transform_2(%arg0: i32) -> (i32, i32) {
    %c0_i32 = arith.constant 0 : i32
    %c0_i32_0 = arith.constant 0 : i32
    %c0_i32_1 = arith.constant 0 : i32
    return %c0_i32, %c0_i32_0 : i32, i32
  }
  func.func @transform_3(%arg0: i32) -> (i32, i32) {
    %c0_i32 = arith.constant 0 : i32
    %c0_i32_0 = arith.constant 0 : i32
    %c0_i32_1 = arith.constant 0 : i32
    return %c0_i32, %c0_i32_0 : i32, i32
  }
  func.func @transform_4(%arg0: i32) -> (i32, i32) {
    %c0_i32 = arith.constant 0 : i32
    %c0_i32_0 = arith.constant 0 : i32
    %c0_i32_1 = arith.constant 0 : i32
    return %c0_i32, %c0_i32_0 : i32, i32
  }
  func.func @transform_5(%arg0: i32) -> (i32, i32) {
    %c0_i32 = arith.constant 0 : i32
    %c0_i32_0 = arith.constant 0 : i32
    %c0_i32_1 = arith.constant 0 : i32
    return %c0_i32, %c0_i32_0 : i32, i32
  }
  func.func @transform_6(%arg0: i32) -> (i32, i32) {
    %c0_i32 = arith.constant 0 : i32
    %c0_i32_0 = arith.constant 0 : i32
    %c0_i32_1 = arith.constant 0 : i32
    return %c0_i32, %c0_i32_0 : i32, i32
  }
  func.func @transform_7(%arg0: i32) -> (i32, i32) {
    %c0_i32 = arith.constant 0 : i32
    %c0_i32_0 = arith.constant 0 : i32
    %c0_i32_1 = arith.constant 0 : i32
    return %c0_i32, %c0_i32_0 : i32, i32
  }
  func.func @transform_8(%arg0: i32) -> (i32, i32) {
    %c0_i32 = arith.constant 0 : i32
    %c0_i32_0 = arith.constant 0 : i32
    %c0_i32_1 = arith.constant 0 : i32
    return %c0_i32, %c0_i32_0 : i32, i32
  }
  func.func @transform_9(%arg0: i32) -> (i32, i32) {
    %c0_i32 = arith.constant 0 : i32
    %c0_i32_0 = arith.constant 0 : i32
    %c0_i32_1 = arith.constant 0 : i32
    return %c0_i32, %c0_i32_0 : i32, i32
  }
  func.func @transform_10(%arg0: i32) -> (i32, i32) {
    %c0_i32 = arith.constant 0 : i32
    %c0_i32_0 = arith.constant 0 : i32
    %c0_i32_1 = arith.constant 0 : i32
    return %c0_i32, %c0_i32_0 : i32, i32
  }
  func.func @transform_11(%arg0: i32) -> (i32, i32) {
    %c0_i32 = arith.constant 0 : i32
    %c0_i32_0 = arith.constant 0 : i32
    return %arg0, %c0_i32 : i32, i32
  }
}

</mosaic_0001>

<bundles_post_ra>
// kernel: vae_forward.1
= control target key start
LH: loop header
LB: loop body
LE: loop exit
PB: predicated region body
PF: predicated region fallthrough
CT: control target
= control target key end

     0   :  { %16 = vsyncpa [#allocation3], 0  ;;  %s1287_s0 = inlined_call_operand.vmem [shape: bf16[16,128], index: 0, kind: input, shape index: {}]   ;;  %s1288_s1 = inlined_call_operand.vmem [shape: bf16[128,128], index: 1, kind: input, shape index: {}]   ;;  %s1289_s2 = inlined_call_operand.vmem [shape: f32[1,128], index: 2, kind: input, shape index: {}]   ;;  %s1290_s3 = inlined_call_operand.hbm [shape: bf16[128,128], index: 3, kind: input, shape index: {}]   ;;  %s1291_s4 = inlined_call_operand.vmem [shape: f32[1,128], index: 4, kind: input, shape index: {}]   ;;  %s1292_s5 = inlined_call_operand.hbm [shape: bf16[128,128], index: 5, kind: input, shape index: {}]   ;;  %s1293_s6 = inlined_call_operand.vmem [shape: f32[1,128], index: 6, kind: input, shape index: {}]   ;;  %s1294_s7 = inlined_call_operand.hbm [shape: bf16[128,128], index: 7, kind: input, shape index: {}]   ;;  %s1295_s8 = inlined_call_operand.vmem [shape: f32[1,128], index: 8, kind: input, shape index: {}]   ;;  %s1296_s9 = inlined_call_operand.hbm [shape: bf16[128,128], index: 9, kind: input, shape index: {}]   ;;  %s1297_s10 = inlined_call_operand.vmem [shape: f32[1,128], index: 10, kind: input, shape index: {}]   ;;  %s1298_s11 = inlined_call_operand.vmem [shape: bf16[16,128], index: 11, kind: output, shape index: {}]  }
   0x1   :  { %17 = vsyncpa [#allocation5], 0 }
   0x2   :  { %18 = vsyncpa [#allocation8], 0  ;;  %s1045_s17 = smov [#allocation4]   ;;  %s1046_s19 = smov [#allocation2]  }
   0x3   :  { %s44_s18 = sshll.u32 %s1045_s17, 4  ;;  %s30_s20 = sshll.u32 %s1046_s19, 4  ;;  %s45_s18 = int_to_ptr.vmem [resolvable:$true] %s44_s18  ;;  %s1113_s20 = int_to_ptr.vmem [resolvable:$true] %s30_s20 }
   0x4   :  { %s951_s23 = scalar_lea.hbm %s1292_s5, 1024 }
   0x5   :  { %p952_p0 = scmp.ne.s32.totalorder %s1292_s5, %s951_s23  ;;  %p955_p1 = scmp.lt.u32.totalorder %s951_s23, %s1292_s5 }
   0x7   :  { %p957_p2 = pnand %p955_p1, %p952_p0 }
   0x9   :  { %960 = shalt.err (!%p957_p2)
}
   0xa   :  { %s961_s28 = scalar_lea.vmem %s45_s18, 1024  ;;  %p966_p4 = scmp.lt.s32.totalorder %s45_s18, %s45_s18 }
   0xb   :  { %p962_p3 = scmp.ne.s32.totalorder %s45_s18, %s961_s28  ;;  %p967_p5 = scmp.lt.s32.totalorder %s961_s28, %s961_s28 }
   0xd   :  { %p968_p6 = por %p967_p5, %p966_p4 }
   0xf   :  { %p969_p7 = pnand %p968_p6, %p962_p3 }
  0x11   :  { %972 = shalt.err (!%p969_p7)
}
  0x12   :  { %s1047_s29 = smov 64   ;;  %s1048_s30 = smov 4  }
  0x13   :  { %50 = dma.hbm_to_vmem [thread:$0]  %s1292_s5, 1024, %s45_s18, [#allocation5], %s1047_s29, %s1047_s29, %s1048_s30  }
  0x14   :  { %s973_s16 = scalar_lea.hbm %s1290_s3, 1024 }
  0x15   :  { %p974_p8 = scmp.ne.s32.totalorder %s1290_s3, %s973_s16  ;;  %p977_p9 = scmp.lt.u32.totalorder %s973_s16, %s1290_s3 }
  0x17   :  { %p979_p10 = pnand %p977_p9, %p974_p8 }
  0x19   :  { %982 = shalt.err (!%p979_p10)
}
  0x1a   :  { %s983_s23 = scalar_lea.vmem %s1113_s20, 1024  ;;  %p988_p12 = scmp.lt.s32.totalorder %s1113_s20, %s1113_s20 }
  0x1b   :  { %p984_p11 = scmp.ne.s32.totalorder %s1113_s20, %s983_s23  ;;  %p989_p13 = scmp.lt.s32.totalorder %s983_s23, %s983_s23 }
  0x1d   :  { %p990_p0 = por %p989_p13, %p988_p12 }
  0x1f   :  { %p991_p1 = pnand %p990_p0, %p984_p11 }
  0x21   :  { %994 = shalt.err (!%p991_p1)
}
  0x22   :  { %36 = dma.hbm_to_vmem [thread:$0]  %s1290_s3, 1024, %s1113_s20, [#allocation3], %s1047_s29, %s1047_s29, %s1048_s30  }
  0x23   :  { %s1049_s24 = smov [#allocation6]   ;;  %s1050_s26 = smov [#allocation7]  }
  0x24   :  { %s58_s25 = sshll.u32 %s1049_s24, 4  ;;  %s72_s27 = sshll.u32 %s1050_s26, 4  ;;  %s59_s25 = int_to_ptr.vmem [resolvable:$true] %s58_s25  ;;  %s1150_s27 = int_to_ptr.vmem [resolvable:$true] %s72_s27 }
  0x25   :  { %s995_s13 = scalar_lea.hbm %s1294_s7, 1024 }
  0x26   :  { %p996_p2 = scmp.ne.s32.totalorder %s1294_s7, %s995_s13  ;;  %p999_p3 = scmp.lt.u32.totalorder %s995_s13, %s1294_s7 }
  0x28   :  { %p1001_p4 = pnand %p999_p3, %p996_p2 }
  0x2a   :  { %1004 = shalt.err (!%p1001_p4)
}
  0x2b   :  { %s1005_s3 = scalar_lea.vmem %s59_s25, 1024  ;;  %p1010_p6 = scmp.lt.s32.totalorder %s59_s25, %s59_s25 }
  0x2c   :  { %p1006_p5 = scmp.ne.s32.totalorder %s59_s25, %s1005_s3  ;;  %p1011_p7 = scmp.lt.s32.totalorder %s1005_s3, %s1005_s3 }
  0x2e   :  { %p1012_p8 = por %p1011_p7, %p1010_p6 }
  0x30   :  { %p1013_p9 = pnand %p1012_p8, %p1006_p5 }
  0x32   :  { %1016 = shalt.err (!%p1013_p9)
}
  0x33   :  { %64 = dma.hbm_to_vmem [thread:$0]  %s1294_s7, 1024, %s59_s25, [#allocation5], %s1047_s29, %s1047_s29, %s1048_s30  }
  0x34   :  { %s1017_s23 = scalar_lea.hbm %s1296_s9, 1024 }
  0x35   :  { %p1018_p10 = scmp.ne.s32.totalorder %s1296_s9, %s1017_s23  ;;  %p1021_p11 = scmp.lt.u32.totalorder %s1017_s23, %s1296_s9 }
  0x37   :  { %p1023_p12 = pnand %p1021_p11, %p1018_p10 }
  0x39   :  { %1026 = shalt.err (!%p1023_p12)
}
  0x3a   :  { %s1027_s28 = scalar_lea.vmem %s1150_s27, 1024  ;;  %p1032_p0 = scmp.lt.s32.totalorder %s1150_s27, %s1150_s27 }
  0x3b   :  { %p1028_p13 = scmp.ne.s32.totalorder %s1150_s27, %s1027_s28  ;;  %p1033_p1 = scmp.lt.s32.totalorder %s1027_s28, %s1027_s28 }
  0x3d   :  { %p1034_p2 = por %p1033_p1, %p1032_p0 }
  0x3f   :  { %p1035_p3 = pnand %p1034_p2, %p1028_p13 }
  0x41   :  { %1038 = shalt.err (!%p1035_p3)
}
  0x42   :  { %78 = dma.hbm_to_vmem [thread:$0]  %s1296_s9, 1024, %s1150_s27, [#allocation8], %s1047_s29, %s1047_s29, %s1048_s30  }
  0x43   :  { %1039 = dma.done.wait [#allocation3], 1024  }
  0x44   :  { %1040 = vsyncadd [#allocation3], 4294966272 }
  0x45   :  { %1041 = dma.done.wait [#allocation5], 2048  }
  0x46   :  { %1042 = vsyncadd [#allocation5], 4294965248 }
  0x47   :  { %1043 = dma.done.wait [#allocation8], 1024  }
  0x48   :  { %1044 = vsyncadd [#allocation8], 4294966272  ;;  %v1051_v0 = vmov 0.0   ;;  %vm1052_vm0 = vmmov 0   ;;  %v909_v1 = vld [vmem:[%s1288_s1] sm:$0xff]   ;;  %v910_v2 = vld [vmem:[%s1288_s1 + $0x8] sm:$0xff]  }
  0x49   :  { %801 = vmatprep.subr.bf16.mxu0 %v1051_v0  ;;  %817 = vmatprep.mubr.msk.bf16.mxu0 %vm1052_vm0, %v1051_v0  ;;  %v911_v3 = vld [vmem:[%s1288_s1 + $0x10] sm:$0xff]   ;;  %v918_v4 = vld [vmem:[#allocation2] sm:$0xff]   ;;  %v912_v5 = vld [vmem:[%s1288_s1 + $0x18] sm:$0xff]  }
  0x4a   :  { %821 = vmatprep.subr.bf16.mxu1 %v1051_v0  ;;  %837 = vmatprep.mubr.msk.bf16.mxu1 %vm1052_vm0, %v1051_v0  ;;  %v919_v6 = vld [vmem:[#allocation2 + $0x8] sm:$0xff]   ;;  %v913_v7 = vld [vmem:[%s1288_s1 + $0x20] sm:$0xff]   ;;  %v920_v8 = vld [vmem:[#allocation2 + $0x10] sm:$0xff]  }
  0x4b   :  { %802 = vmatpush3.bf16.msra.mxu0 %v909_v1  ;;  %822 = vmatpush3.bf16.msra.mxu1 %v918_v4  ;;  %v914_v9 = vld [vmem:[%s1288_s1 + $0x28] sm:$0xff]   ;;  %v921_v10 = vld [vmem:[#allocation2 + $0x18] sm:$0xff]   ;;  %v915_v11 = vld [vmem:[%s1288_s1 + $0x30] sm:$0xff]  }
  0x4c   :  { %803 = vmatprep.subr.bf16.mxu0 %v1051_v0  ;;  %823 = vmatprep.subr.bf16.mxu1 %v1051_v0  ;;  %v922_v12 = vld [vmem:[#allocation2 + $0x20] sm:$0xff]   ;;  %v916_v13 = vld [vmem:[%s1288_s1 + $0x38] sm:$0xff]   ;;  %v923_v15 = vld [vmem:[#allocation2 + $0x28] sm:$0xff]  }
  0x4d   :  { %v1229_v14 = vld [vmem:[%s1287_s0] sm:$0xff]   ;;  %v924_v16 = vld [vmem:[#allocation2 + $0x30] sm:$0xff]   ;;  %v925_v17 = vld [vmem:[#allocation2 + $0x38] sm:$0xff]  }
  0x4e   :  { %v926_v18 = vld [vmem:[#allocation4] sm:$0xff]   ;;  %v927_v19 = vld [vmem:[#allocation4 + $0x8] sm:$0xff]   ;;  %v928_v20 = vld [vmem:[#allocation4 + $0x10] sm:$0xff]   ;;  %v96_v61 = vunpack.c.l.bf16 %v1229_v14  ;;  %v97_v62 = vunpack.c.h.bf16 %v1229_v14 }
  0x4f   :  { %804 = vmatpush3.bf16.msra.mxu0 %v910_v2  ;;  %824 = vmatpush3.bf16.msra.mxu1 %v919_v6  ;;  %v929_v21 = vld [vmem:[#allocation4 + $0x18] sm:$0xff]   ;;  %v930_v22 = vld [vmem:[#allocation4 + $0x20] sm:$0xff]   ;;  %v931_v23 = vld [vmem:[#allocation4 + $0x28] sm:$0xff]  }
  0x50   :  { %805 = vmatprep.subr.bf16.mxu0 %v1051_v0  ;;  %825 = vmatprep.subr.bf16.mxu1 %v1051_v0  ;;  %v701_v24 = vld [vmem:[%s1289_s2] ss:$0 sm:$0xff]  ;;  %v932_v34 = vld [vmem:[#allocation4 + $0x30] sm:$0xff]   ;;  %v933_v35 = vld [vmem:[#allocation4 + $0x38] sm:$0xff]  }
  0x51   :  { %v934_v36 = vld [vmem:[#allocation6] sm:$0xff]   ;;  %v935_v37 = vld [vmem:[#allocation6 + $0x8] sm:$0xff]   ;;  %v936_v38 = vld [vmem:[#allocation6 + $0x10] sm:$0xff]  }
  0x52   :  { %v937_v39 = vld [vmem:[#allocation6 + $0x18] sm:$0xff]   ;;  %v938_v40 = vld [vmem:[#allocation6 + $0x20] sm:$0xff]   ;;  %v939_v51 = vld [vmem:[#allocation6 + $0x28] sm:$0xff]  }
  0x53   :  { %806 = vmatpush3.bf16.msra.mxu0 %v911_v3  ;;  %826 = vmatpush3.bf16.msra.mxu1 %v920_v8  ;;  %v711_v41 = vld [vmem:[%s1291_s4] ss:$0 sm:$0xff]  ;;  %v940_v52 = vld [vmem:[#allocation6 + $0x30] sm:$0xff]   ;;  %v941_v53 = vld [vmem:[#allocation6 + $0x38] sm:$0xff]  }
  0x54   :  { %807 = vmatprep.subr.bf16.mxu0 %v1051_v0  ;;  %827 = vmatprep.subr.bf16.mxu1 %v1051_v0  ;;  %v942_v54 = vld [vmem:[#allocation7] sm:$0xff]   ;;  %v943_v55 = vld [vmem:[#allocation7 + $0x8] sm:$0xff]   ;;  %v944_v56 = vld [vmem:[#allocation7 + $0x10] sm:$0xff]  }
  0x55   :  { %v945_v57 = vld [vmem:[#allocation7 + $0x18] sm:$0xff]   ;;  %v946_v58 = vld [vmem:[#allocation7 + $0x20] sm:$0xff]   ;;  %v947_v59 = vld [vmem:[#allocation7 + $0x28] sm:$0xff]  }
  0x56   :  { %v720_v60 = vld [vmem:[%s1293_s6] ss:$0 sm:$0xff] }
  0x57   :  { %808 = vmatpush3.bf16.msra.mxu0 %v912_v5  ;;  %828 = vmatpush3.bf16.msra.mxu1 %v921_v10  ;;  %v448_v5 = vadd.f32 1.0, %v96_v61 }
  0x58   :  { %809 = vmatprep.subr.bf16.mxu0 %v1051_v0  ;;  %829 = vmatprep.subr.bf16.mxu1 %v1051_v0 }
  0x5b   :  { %810 = vmatpush3.bf16.msra.mxu0 %v913_v7  ;;  %830 = vmatpush3.bf16.msra.mxu1 %v922_v12  ;;  %v449_v7 = vadd.f32 1.0, %v97_v62 }
  0x5c   :  { %811 = vmatprep.subr.bf16.mxu0 %v1051_v0  ;;  %831 = vmatprep.subr.bf16.mxu1 %v1051_v0 }
  0x5f   :  { %812 = vmatpush3.bf16.msra.mxu0 %v914_v9  ;;  %832 = vmatpush3.bf16.msra.mxu1 %v923_v15  ;;  %v949_v15 = vld [vmem:[#allocation7 + $0x38] sm:$0xff]  }
  0x60   :  { %813 = vmatprep.subr.bf16.mxu0 %v1051_v0  ;;  %833 = vmatprep.subr.bf16.mxu1 %v1051_v0 }
  0x63   :  { %814 = vmatpush3.bf16.msra.mxu0 %v915_v11  ;;  %834 = vmatpush3.bf16.msra.mxu1 %v924_v16 }
  0x64   :  { %815 = vmatprep.subr.bf16.mxu0 %v1051_v0  ;;  %835 = vmatprep.subr.bf16.mxu1 %v1051_v0 }
  0x67   :  { %816 = vmatpush3.bf16.msra.mxu0 %v916_v13  ;;  %836 = vmatpush3.bf16.msra.mxu1 %v925_v17  ;;  %v948_v13 = vld [vmem:[#allocation7 + $0x30] sm:$0xff]  }
  0x68   :  { %841 = vmatprep.subr.bf16.mxu0 %v1051_v0  ;;  %861 = vmatprep.subr.bf16.mxu1 %v1051_v0 }
  0x6a   :  { %818 = vmatmul.mubr.bf16.vlgmr.msra.gmra.mrb[0].mxu0 %v1229_v14  ;;  %v729_v14 = vld [vmem:[%s1295_s8] ss:$0 sm:$0xff] }
  0x6b   :  { %857 = vmatprep.mubr.msk.bf16.mxu0 %vm1052_vm0, %v1051_v0  ;;  %842 = vmatpush3.bf16.msra.mxu0 %v926_v18 }
  0x6c   :  { %843 = vmatprep.subr.bf16.mxu0 %v1051_v0 }
  0x6f   :  { %844 = vmatpush3.bf16.msra.mxu0 %v927_v19 }
  0x70   :  { %845 = vmatprep.subr.bf16.mxu0 %v1051_v0 }
  0x73   :  { %846 = vmatpush3.bf16.msra.mxu0 %v928_v20 }
  0x74   :  { %847 = vmatprep.subr.bf16.mxu0 %v1051_v0 }
  0x77   :  { %848 = vmatpush3.bf16.msra.mxu0 %v929_v21 }
  0x78   :  { %849 = vmatprep.subr.bf16.mxu0 %v1051_v0 }
  0x7b   :  { %850 = vmatpush3.bf16.msra.mxu0 %v930_v22 }
  0x7c   :  { %851 = vmatprep.subr.bf16.mxu0 %v1051_v0 }
  0x7f   :  { %852 = vmatpush3.bf16.msra.mxu0 %v931_v23 }
  0x80   :  { %853 = vmatprep.subr.bf16.mxu0 %v1051_v0 }
  0x83   :  { %854 = vmatpush3.bf16.msra.mxu0 %v932_v34 }
  0x84   :  { %855 = vmatprep.subr.bf16.mxu0 %v1051_v0 }
  0x87   :  { %856 = vmatpush3.bf16.msra.mxu0 %v933_v35 }
  0x88   :  { %881 = vmatprep.subr.bf16.mxu0 %v1051_v0 }
 0x13d   :  { %v209_v25 = vpop.f32.mrb[0].mxu0 }
 0x13e   :  { %v210_v26 = vadd.f32 %v701_v24, %v209_v25  ;;  %v819_v27 = vpop.f32.mrb[1].mxu0 }
 0x13f   :  { %v212_v28 = vpop.f32.mrb[2].mxu0 }
 0x140   :  { %v213_v29 = vadd.f32 %v701_v24, %v212_v28  ;;  %v820_v30 = vpop.f32.mrb[3].mxu0  ;;  %v216_v31 = vmax.f32 %v210_v26, 0.0 }
 0x142   :  { %v217_v32 = vmax.f32 %v213_v29, 0.0 }
 0x144   :  { %v218_v33 = vpack.c.bf16 %v217_v32, %v216_v31 }
 0x146   :  { %838 = vmatmul.mubr.bf16.vlgmr.msra.gmra.mrb[0].mxu1 %v218_v33 }
 0x147   :  { %877 = vmatprep.mubr.msk.bf16.mxu1 %vm1052_vm0, %v1051_v0  ;;  %862 = vmatpush3.bf16.msra.mxu1 %v934_v36 }
 0x148   :  { %863 = vmatprep.subr.bf16.mxu1 %v1051_v0 }
 0x14b   :  { %864 = vmatpush3.bf16.msra.mxu1 %v935_v37 }
 0x14c   :  { %865 = vmatprep.subr.bf16.mxu1 %v1051_v0 }
 0x14f   :  { %866 = vmatpush3.bf16.msra.mxu1 %v936_v38 }
 0x150   :  { %867 = vmatprep.subr.bf16.mxu1 %v1051_v0 }
 0x153   :  { %868 = vmatpush3.bf16.msra.mxu1 %v937_v39 }
 0x154   :  { %869 = vmatprep.subr.bf16.mxu1 %v1051_v0 }
 0x157   :  { %870 = vmatpush3.bf16.msra.mxu1 %v938_v40 }
 0x158   :  { %871 = vmatprep.subr.bf16.mxu1 %v1051_v0 }
 0x15b   :  { %872 = vmatpush3.bf16.msra.mxu1 %v939_v51 }
 0x15c   :  { %873 = vmatprep.subr.bf16.mxu1 %v1051_v0 }
 0x15f   :  { %874 = vmatpush3.bf16.msra.mxu1 %v940_v52 }
 0x160   :  { %875 = vmatprep.subr.bf16.mxu1 %v1051_v0 }
 0x163   :  { %876 = vmatpush3.bf16.msra.mxu1 %v941_v53 }
 0x219   :  { %v324_v42 = vpop.f32.mrb[0].mxu1 }
 0x21a   :  { %v325_v43 = vadd.f32 %v711_v41, %v324_v42  ;;  %v839_v44 = vpop.f32.mrb[1].mxu1 }
 0x21b   :  { %v327_v45 = vpop.f32.mrb[2].mxu1 }
 0x21c   :  { %v328_v46 = vadd.f32 %v711_v41, %v327_v45  ;;  %v840_v47 = vpop.f32.mrb[3].mxu1  ;;  %v331_v48 = vmax.f32 %v325_v43, 0.0 }
 0x21e   :  { %v332_v49 = vmax.f32 %v328_v46, 0.0 }
 0x220   :  { %v333_v50 = vpack.c.bf16 %v332_v49, %v331_v48 }
 0x222   :  { %858 = vmatmul.mubr.bf16.vlgmr.msra.gmra.mrb[4].mxu0 %v333_v50 }
 0x223   :  { %897 = vmatprep.mubr.msk.bf16.mxu0 %vm1052_vm0, %v1051_v0  ;;  %882 = vmatpush3.bf16.msra.mxu0 %v942_v54 }
 0x224   :  { %883 = vmatprep.subr.bf16.mxu0 %v1051_v0 }
 0x227   :  { %884 = vmatpush3.bf16.msra.mxu0 %v943_v55 }
 0x228   :  { %885 = vmatprep.subr.bf16.mxu0 %v1051_v0 }
 0x22b   :  { %886 = vmatpush3.bf16.msra.mxu0 %v944_v56 }
 0x22c   :  { %887 = vmatprep.subr.bf16.mxu0 %v1051_v0 }
 0x22f   :  { %888 = vmatpush3.bf16.msra.mxu0 %v945_v57 }
 0x230   :  { %889 = vmatprep.subr.bf16.mxu0 %v1051_v0 }
 0x233   :  { %890 = vmatpush3.bf16.msra.mxu0 %v946_v58 }
 0x234   :  { %891 = vmatprep.subr.bf16.mxu0 %v1051_v0 }
 0x237   :  { %892 = vmatpush3.bf16.msra.mxu0 %v947_v59 }
 0x238   :  { %893 = vmatprep.subr.bf16.mxu0 %v1051_v0 }
 0x23b   :  { %894 = vmatpush3.bf16.msra.mxu0 %v948_v13 }
 0x23c   :  { %895 = vmatprep.subr.bf16.mxu0 %v1051_v0  ;;  %v738_v0 = vld [vmem:[%s1297_s10] ss:$0 sm:$0xff] }
 0x23f   :  { %896 = vmatpush3.bf16.msra.mxu0 %v949_v15 }
 0x2f5   :  { %v439_v63 = vpop.f32.mrb[4].mxu0 }
 0x2f6   :  { %v440_v1 = vadd.f32 %v720_v60, %v439_v63  ;;  %v859_v2 = vpop.f32.mrb[5].mxu0 }
 0x2f7   :  { %v442_v3 = vpop.f32.mrb[6].mxu0 }
 0x2f8   :  { %v446_v4 = vmax.f32 %v440_v1, 0.0  ;;  %v443_v6 = vadd.f32 %v720_v60, %v442_v3  ;;  %v860_v8 = vpop.f32.mrb[7].mxu0 }
 0x2fa   :  { %v447_v9 = vmax.f32 %v443_v6, 0.0  ;;  %v450_v10 = vmul.f32 %v448_v5, %v446_v4 }
 0x2fc   :  { %v451_v11 = vmul.f32 %v449_v7, %v447_v9 }
 0x2fe   :  { %v452_v12 = vpack.c.bf16 %v451_v11, %v450_v10 }
 0x300   :  { %878 = vmatmul.mubr.bf16.vlgmr.msra.gmra.mrb[4].mxu1 %v452_v12 }
 0x3d3   :  { %v558_v16 = vpop.f32.mrb[4].mxu1 }
 0x3d4   :  { %v559_v17 = vadd.f32 %v729_v14, %v558_v16  ;;  %v879_v18 = vpop.f32.mrb[5].mxu1 }
 0x3d5   :  { %v561_v19 = vpop.f32.mrb[6].mxu1 }
 0x3d6   :  { %v562_v20 = vadd.f32 %v729_v14, %v561_v19  ;;  %v880_v21 = vpop.f32.mrb[7].mxu1  ;;  %v565_v22 = vmax.f32 %v559_v17, 0.0 }
 0x3d8   :  { %v566_v23 = vmax.f32 %v562_v20, 0.0 }
 0x3da   :  { %v567_v24 = vpack.c.bf16 %v566_v23, %v565_v22 }
 0x3dc   :  { %898 = vmatmul.mubr.bf16.vlgmr.msra.gmra.mrb[8].mxu0 %v567_v24 }
 0x4af   :  { %v673_v25 = vpop.f32.mrb[8].mxu0 }
 0x4b0   :  { %v674_v26 = vadd.f32 %v738_v0, %v673_v25  ;;  %v899_v27 = vpop.f32.mrb[9].mxu0 }
 0x4b1   :  { %v676_v28 = vpop.f32.mrb[10].mxu0 }
 0x4b2   :  { %v680_v29 = vmax.f32 %v674_v26, 0.0  ;;  %v677_v30 = vadd.f32 %v738_v0, %v676_v28  ;;  %v900_v31 = vpop.f32.mrb[11].mxu0 }
 0x4b4   :  { %v681_v32 = vmax.f32 %v677_v30, 0.0  ;;  %v682_v33 = vadd.f32 %v680_v29, %v446_v4 }
 0x4b6   :  { %v683_v34 = vadd.f32 %v681_v32, %v447_v9 }
 0x4b8   :  { %v754_v35 = vpack.c.bf16 %v683_v34, %v682_v33 }
 0x4ba   :  { %755 = vst [vmem:[%s1298_s11] sm:$0xff] %v754_v35  }
 0x4bb   :  { %698 = vsyncpa [#allocation3], 1 }
 0x4bc   :  { %699 = vsyncpa [#allocation5], 1 }
 0x4bd   :  { %700 = vsyncpa [#allocation8], 1 }

</bundles_post_ra>
